<compile_context>
chip_gen: v7x
topology: tpu7x:2x2x1
jax: 0.10.0
libtpu: 0.0.40
codegen_flags: <defaults>
</compile_context>

<pallas_src>
import functools

import jax
import jax.numpy as jnp
from jax import lax
from jax.experimental import pallas as pl
from jax.experimental.pallas import tpu as pltpu


# ---------------------------------------------------------------------------
# Stage 1: row-wise L2 normalization.
# ---------------------------------------------------------------------------
def _normalize_kernel(x_ref, o_ref, *, norm_eps):
    """F.normalize(x, dim=-1): x / max(||x||_2, norm_eps); math in f32."""
    x = x_ref[...].astype(jnp.float32)
    nsq = jnp.sum(x * x, axis=-1, keepdims=True)
    # rsqrt of the clamped squared norm == divide by max(norm, eps); rsqrt runs
    # on the EUP, the per-element work is a VPU multiply.
    inv = lax.rsqrt(jnp.maximum(nsq, norm_eps * norm_eps))
    o_ref[...] = (x * inv).astype(o_ref.dtype)


# ---------------------------------------------------------------------------
# Stage 2: tiled similarity + per-row NT-Xent loss.
# ---------------------------------------------------------------------------
def _accum_denominator(e, denom_ref, *, qi, ki, tq, tk, n_valid, n_total):
    """denom += row-sum(e) with the global diagonal (and any padded columns)
    zeroed.  The iota/compare/select masking only runs on the tiles that
    intersect the diagonal (or the padded tail); all other tiles take the
    unmasked row-sum path (free-filler removal / lower vreg pressure)."""
    diag_ki = (qi * tq) // tk                 # valid because tk % tq == 0
    padded = n_valid < n_total                # static Python bool
    needs_mask = ki == diag_ki
    if padded:
        needs_mask = jnp.logical_or(needs_mask, ki == pl.num_programs(1) - 1)

    @pl.when(needs_mask)
    def _():
        row_g = lax.broadcasted_iota(jnp.int32, (tq, tk), 0) + qi * tq
        col_g = lax.broadcasted_iota(jnp.int32, (tq, tk), 1) + ki * tk
        keep = row_g != col_g
        if padded:
            keep = jnp.logical_and(keep, col_g < n_valid)
        denom_ref[...] += jnp.sum(jnp.where(keep, e, 0.0), axis=1,
                                  keepdims=True)

    @pl.when(jnp.logical_not(needs_mask))
    def _():
        denom_ref[...] += jnp.sum(e, axis=1, keepdims=True)


def _ntxent_kernel_fast(q_ref, k_ref, out_ref, denom_ref, pos_ref, *,
                        inv_temp, eps, b, n_valid, n_total):
    """Fast path (requires B % tq == 0 and tk % tq == 0): the positive-pair
    exp(sim) is extracted from the local (offset) diagonal of the sim tile
    that holds the partner columns — no partner input / jnp.roll needed."""
    qi = pl.program_id(0)
    ki = pl.program_id(1)
    nk = pl.num_programs(1)
    tq, tk = q_ref.shape[0], k_ref.shape[0]

    @pl.when(ki == 0)
    def _():
        denom_ref[...] = jnp.zeros_like(denom_ref)

    # (tq, tk) tile of the similarity matrix straight off the MXU; contracting
    # dims (1, 1) avoid materializing k.T (no XLU transpose / extra VMEM copy).
    sim = lax.dot_general(
        q_ref[...], k_ref[...],
        dimension_numbers=(((1,), (1,)), ((), ())),
        preferred_element_type=jnp.float32)
    # Rows are L2-normalized so |sim| <= 1; no max-subtraction needed (exp(1/T)
    # only overflows f32 for T < ~0.012, matching the torch reference).
    e = jnp.exp(sim * inv_temp)

    _accum_denominator(e, denom_ref, qi=qi, ki=ki, tq=tq, tk=tk,
                       n_valid=n_valid, n_total=n_total)

    # Positive pair of query row i is column (i + B) mod N.  With B % tq == 0
    # and tk % tq == 0 the whole query tile's positives live inside a single
    # key tile, on an offset local diagonal of this sim tile.
    q_start = qi * tq
    pos_start = jnp.where(q_start < b, q_start + b, q_start - b)
    pos_ki = pos_start // tk
    pos_off = pos_start - pos_ki * tk

    @pl.when(ki == pos_ki)
    def _():
        row_l = lax.broadcasted_iota(jnp.int32, (tq, tk), 0)
        col_l = lax.broadcasted_iota(jnp.int32, (tq, tk), 1)
        pos_mask = col_l == row_l + pos_off   # never on the global diagonal
        pos_ref[...] = jnp.sum(jnp.where(pos_mask, e, 0.0), axis=1,
                               keepdims=True)

    @pl.when(ki == nk - 1)
    def _():
        # Exact division (not approx reciprocal) keeps the reference's eps
        # semantics and f32 accuracy; this only fires once per query tile.
        out_ref[...] = -jnp.log(pos_ref[...] / (denom_ref[...] + eps) + eps)


def _ntxent_kernel_partner(q_ref, k_ref, p_ref, out_ref, denom_ref, *,
                           inv_temp, eps, n_valid, n_total):
    """Fallback for awkward shapes (B % tq != 0): positive similarity via an
    elementwise product with an explicit partner view (row i <-> i +/- B)."""
    qi = pl.program_id(0)
    ki = pl.program_id(1)
    nk = pl.num_programs(1)
    tq, tk = q_ref.shape[0], k_ref.shape[0]

    @pl.when(ki == 0)
    def _():
        denom_ref[...] = jnp.zeros_like(denom_ref)

    sim = lax.dot_general(
        q_ref[...], k_ref[...],
        dimension_numbers=(((1,), (1,)), ((), ())),
        preferred_element_type=jnp.float32)
    e = jnp.exp(sim * inv_temp)

    _accum_denominator(e, denom_ref, qi=qi, ki=ki, tq=tq, tk=tk,
                       n_valid=n_valid, n_total=n_total)

    @pl.when(ki == nk - 1)
    def _():
        pos = jnp.sum(
            q_ref[...].astype(jnp.float32) * p_ref[...].astype(jnp.float32),
            axis=-1, keepdims=True)                        # (tq, 1)
        e_pos = jnp.exp(pos * inv_temp)
        out_ref[...] = -jnp.log(e_pos / (denom_ref[...] + eps) + eps)


# ---------------------------------------------------------------------------
# Tile selection helpers.
# ---------------------------------------------------------------------------
def _pick_row_tile(n_pad):
    for t in (512, 256, 128):
        if n_pad % t == 0:
            return t
    return 128  # unreachable: n_pad is a multiple of 128


def _pick_query_tile(n_pad):
    # Prefer nq >= 2 so the "parallel" query axis can shard across both
    # TensorCores on v7x.
    for t in (512, 256, 128):
        if n_pad % t == 0 and n_pad // t >= 2:
            return t
    return 128  # n_pad == 128


def _stage2_vmem_estimate(tq, tk, d, isz, with_partner):
    return (5 * tq * tk * 4                        # sim/exp/mask temporaries
            + 2 * (tq + tk) * d * isz              # double-buffered q/k blocks
            + (2 * tq * d * isz if with_partner else 0)
            + 4 * tq * 4                           # out blocks + scratches
            + (2 << 20))                           # slack


def _pick_key_tile(n_pad, tq, d, isz, budget=36 * 2**20):
    # Enlarge the key tile (fewer grid steps -> less per-step overhead) while
    # staying inside a conservative VMEM budget (v7x has only 64 MiB physical).
    for t in (2048, 1024, 512, 256, 128):
        if n_pad % t == 0 and t % tq == 0:
            if _stage2_vmem_estimate(tq, t, d, isz, True) <= budget:
                return t
    return tq


# ---------------------------------------------------------------------------
# Public entry point.
# ---------------------------------------------------------------------------
def ntxent_loss(embedding, temperature=0.5, eps=1e-8, compute_dtype=None,
                block_q=None, block_k=None):
    """NT-Xent loss; embedding = concat([img_emb, aug_emb]) of shape (2B, D).

    compute_dtype: dtype fed to the MXU for the similarity matmul.  Defaults to
    bf16 (native MXU rate on v5e/v6e/v7x); normalization math, exp/log and the
    denominator always stay in f32.
    """
    # TODO(synk): the torch.distributed all_gather (multi_gpu=True) path has no
    # single-device equivalent here; would need pltpu.make_async_remote_copy.
    N, D = embedding.shape
    assert N % 2 == 0 and N >= 2, "first dim must be B * chunk with chunk = 2"
    B = N // 2  # positives are row i <-> row (i + B) mod N (chunk == 2 only)
    cdt = jnp.dtype(jnp.bfloat16 if compute_dtype is None else compute_dtype)
    isz = int(cdt.itemsize)

    # Pad rows up to a multiple of 128 so every shape keeps the tiled fast
    # path; padded columns are masked out of the denominator in-kernel and
    # padded rows are dropped from the final sum.
    Np = ((N + 127) // 128) * 128
    x = embedding if Np == N else jnp.pad(embedding, ((0, Np - N), (0, 0)))

    # ---- stage 1: row-wise L2 normalization (f32 math, stored in `cdt`) ----
    tr = _pick_row_tile(Np)
    xn = pl.pallas_call(
        functools.partial(_normalize_kernel, norm_eps=1e-12),
        out_shape=jax.ShapeDtypeStruct((Np, D), cdt),
        grid=(Np // tr,),
        in_specs=[pl.BlockSpec((tr, D), lambda i: (i, 0))],
        out_specs=pl.BlockSpec((tr, D), lambda i: (i, 0)),
        compiler_params=pltpu.CompilerParams(dimension_semantics=("parallel",)),
    )(x)

    # ---- stage 2: tiled similarity + per-row NT-Xent loss ----
    tq = _pick_query_tile(Np) if block_q is None else int(block_q)
    tk = _pick_key_tile(Np, tq, D, isz) if block_k is None else int(block_k)
    assert Np % tq == 0 and Np % tk == 0 and tk % tq == 0, (tq, tk, Np)
    nq, nk = Np // tq, Np // tk

    # Fast path: positive read off the sim tile's local diagonal (no partner
    # input).  Needs the query tile to not straddle the B boundary.
    fast = (B % tq == 0)

    vmem_est = _stage2_vmem_estimate(tq, tk, D, isz, with_partner=not fast)
    # Floor at 32 MiB (<= default scoped on v6e/v7x, safe raise on v5e); cap at
    # 48 MiB so we never exceed v7x's 64 MiB physical VMEM.
    vmem_limit = int(min(max(vmem_est, 32 * 2**20), 48 * 2**20))

    common = dict(
        out_shape=jax.ShapeDtypeStruct((Np, 1), jnp.float32),
        grid=(nq, nk),
        out_specs=pl.BlockSpec((tq, 1), lambda i, j: (i, 0)),
        compiler_params=pltpu.CompilerParams(
            # query-row axis "parallel" -> sharded across v7x's 2 TensorCores;
            # key axis "arbitrary" (denominator accumulation order matters).
            dimension_semantics=("parallel", "arbitrary"),
            vmem_limit_bytes=vmem_limit,
        ),
    )

    if fast:
        per_row = pl.pallas_call(
            functools.partial(_ntxent_kernel_fast,
                              inv_temp=1.0 / temperature, eps=eps, b=B,
                              n_valid=N, n_total=Np),
            in_specs=[
                pl.BlockSpec((tq, D), lambda i, j: (i, 0)),   # query rows
                pl.BlockSpec((tk, D), lambda i, j: (j, 0)),   # key rows
            ],
            scratch_shapes=[pltpu.VMEM((tq, 1), jnp.float32),   # denominator
                            pltpu.VMEM((tq, 1), jnp.float32)],  # positives
            **common,
        )(xn, xn)
    else:
        # Fallback partner view (layout plumbing only, no compute).  Note: in
        # bf16 compute the positive here is an f32 elementwise product of bf16
        # vectors while the denominator comes from the bf16 MXU matmul.
        xp = jnp.roll(xn[:N], shift=B, axis=0)
        if Np != N:
            xp = jnp.pad(xp, ((0, Np - N), (0, 0)))
        per_row = pl.pallas_call(
            functools.partial(_ntxent_kernel_partner,
                              inv_temp=1.0 / temperature, eps=eps,
                              n_valid=N, n_total=Np),
            in_specs=[
                pl.BlockSpec((tq, D), lambda i, j: (i, 0)),   # query rows
                pl.BlockSpec((tk, D), lambda i, j: (j, 0)),   # key rows
                pl.BlockSpec((tq, D), lambda i, j: (i, 0)),   # partners
            ],
            scratch_shapes=[pltpu.VMEM((tq, 1), jnp.float32)],
            **common,
        )(xn, xn, xp)

    # Padded rows dropped; torch.mean of the scalar NT-Xent loss is itself.
    return jnp.sum(per_row[:N]) / (2.0 * B)


# ---------------------------------------------------------------------------
# Pure-jnp reference (transcription of the PyTorch module).
# ---------------------------------------------------------------------------
def _reference(embedding, temperature=0.5, eps=1e-8):
    x = embedding.astype(jnp.float32)
    x = x / jnp.maximum(jnp.linalg.norm(x, axis=-1, keepdims=True), 1e-12)
    sim = x @ x.T
    N = sim.shape[0]
    B = N // 2
    eye = jnp.eye(N, dtype=jnp.float32)
    e = jnp.exp(sim / temperature) * (1.0 - eye)
    denom = jnp.sum(e, axis=1, keepdims=True)
    m = -jnp.log(e / (denom + eps) + eps)
    return (jnp.sum(jnp.diag(m[:B, B:])) + jnp.sum(jnp.diag(m[B:, :B]))) / (2 * B)


if __name__ == "__main__":
    key = jax.random.PRNGKey(0)

    # embedding of [img, aug_img] stacked along batch: (B*chunk, D)
    B, chunk, D = 4, 2, 128
    emb = jax.random.normal(key, (B * chunk, D), dtype=jnp.float32)
    ref = _reference(emb, temperature=0.5)

    # 1) default bf16 compute on the MXU (padded fallback-partner path)
    loss_bf16 = jax.block_until_ready(ntxent_loss(emb, temperature=0.5))
    assert jnp.allclose(loss_bf16, ref, rtol=5e-2, atol=1e-1), (loss_bf16, ref)

    # 2) same inputs, f32 compute (tight tolerance; padded fallback path)
    loss_f32 = jax.block_until_ready(
        ntxent_loss(emb, temperature=0.5, compute_dtype=jnp.float32))
    assert jnp.allclose(loss_f32, ref, rtol=5e-5, atol=5e-5), (loss_f32, ref)

    # 3) fast path: positive from the sim tile's local diagonal, nq = 2
    emb2 = jax.random.normal(jax.random.PRNGKey(0), (512, 128), jnp.float32)
    ref2 = _reference(emb2, temperature=0.5)
    loss2 = jax.block_until_ready(
        ntxent_loss(emb2, temperature=0.5, compute_dtype=jnp.float32))
    assert jnp.allclose(loss2, ref2, rtol=5e-5, atol=5e-5), (loss2, ref2)

    # 4) multi key-tile accumulation, positive tile != last tile (block override)
    emb3 = jax.random.normal(jax.random.PRNGKey(1), (1024, 64), jnp.float32)
    ref3 = _reference(emb3, temperature=0.5)
    loss3 = jax.block_until_ready(
        ntxent_loss(emb3, temperature=0.5, compute_dtype=jnp.float32,
                    block_q=256, block_k=256))
    assert jnp.allclose(loss3, ref3, rtol=5e-5, atol=5e-5), (loss3, ref3)

    print("KERNEL_OK")
</pallas_src>

<mosaic_0001>
module attributes {stable_mosaic.version = 11 : i64} {
  func.func @_normalize_kernel(%arg0: i32, %arg1: memref<128x128xf32, #tpu.memory_space<vmem>>, %arg2: memref<128x128xbf16, #tpu.memory_space<vmem>>) attributes {dimension_semantics = [#tpu.dimension_semantics<parallel>], iteration_bounds = array<i64: 1>, scalar_prefetch = 0 : i64, scratch_operands = 0 : i64, tpu.core_type = #tpu.core_type<tc>, window_params = [{transform_indices = @transform_0, window_bounds = array<i64: 128, 128>}, {transform_indices = @transform_1, window_bounds = array<i64: 128, 128>}]} {
    %c0 = arith.constant 0 : index
    %c0_0 = arith.constant 0 : index
    %0 = vector.load %arg1[%c0, %c0_0] : memref<128x128xf32, #tpu.memory_space<vmem>>, vector<128x128xf32>
    %1 = arith.mulf %0, %0 : vector<128x128xf32>
    %cst = arith.constant dense<0.000000e+00> : vector<128xf32>
    %2 = vector.multi_reduction <add>, %1, %cst [1] : vector<128x128xf32> to vector<128xf32>
    %3 = vector.shape_cast %2 : vector<128xf32> to vector<128x1xf32>
    %cst_1 = arith.constant 1.000000e-24 : f32
    %4 = vector.broadcast %cst_1 : f32 to vector<128x1xf32>
    %5 = arith.maximumf %3, %4 : vector<128x1xf32>
    %6 = math.rsqrt %5 : vector<128x1xf32>
    %7 = vector.broadcast %6 : vector<128x1xf32> to vector<128x128xf32>
    %8 = arith.mulf %0, %7 : vector<128x128xf32>
    %9 = arith.truncf %8 : vector<128x128xf32> to vector<128x128xbf16>
    %c0_2 = arith.constant 0 : index
    %c0_3 = arith.constant 0 : index
    %10 = vector.load %arg2[%c0_2, %c0_3] : memref<128x128xbf16, #tpu.memory_space<vmem>>, vector<128x128xbf16>
    tpu.vector_store %arg2[%c0_2, %c0_3], %9 {strides = array<i32>} : memref<128x128xbf16, #tpu.memory_space<vmem>>, vector<128x128xbf16>,
    return
  }
  func.func @transform_0(%arg0: i32) -> (i32, i32) {
    %c0_i32 = arith.constant 0 : i32
    %c0_i32_0 = arith.constant 0 : i32
    return %arg0, %c0_i32 : i32, i32
  }
  func.func @transform_1(%arg0: i32) -> (i32, i32) {
    %c0_i32 = arith.constant 0 : i32
    %c0_i32_0 = arith.constant 0 : i32
    return %arg0, %c0_i32 : i32, i32
  }
}

</mosaic_0001>

<bundles_post_ra>
// kernel: tpu_custom_call.1
= control target key start
LH: loop header
LB: loop body
LE: loop exit
PB: predicated region body
PF: predicated region fallthrough
CT: control target
= control target key end

     0   :  { %6 = vsyncpa [#allocation3], 0  ;;  %s517_s0 = inlined_call_operand.hbm [shape: f32[128,128], index: 0, kind: input, shape index: {}]   ;;  %s518_s1 = inlined_call_operand.hbm [shape: bf16[128,128], index: 1, kind: output, shape index: {}]  }
   0x1   :  { %7 = vsyncpa [#allocation4], 0  ;;  %s397_s6 = smov [#allocation2]   ;;  %s349_s10 = scalar_lea.hbm %s517_s0, 2048 }
   0x2   :  { %s13_s7 = sshll.u32 %s397_s6, 4  ;;  %p350_p0 = scmp.ne.s32.totalorder %s517_s0, %s349_s10  ;;  %s14_s7 = int_to_ptr.vmem [resolvable:$true] %s13_s7 }
   0x3   :  { %p353_p1 = scmp.lt.u32.totalorder %s349_s10, %s517_s0 }
   0x5   :  { %p355_p2 = pnand %p353_p1, %p350_p0 }
   0x7   :  { %358 = shalt.err (!%p355_p2)
}
   0x8   :  { %s359_s15 = scalar_lea.vmem %s14_s7, 2048  ;;  %p364_p4 = scmp.lt.s32.totalorder %s14_s7, %s14_s7 }
   0x9   :  { %p360_p3 = scmp.ne.s32.totalorder %s14_s7, %s359_s15  ;;  %p365_p5 = scmp.lt.s32.totalorder %s359_s15, %s359_s15 }
   0xb   :  { %p366_p6 = por %p365_p5, %p364_p4 }
   0xd   :  { %p367_p7 = pnand %p366_p6, %p360_p3 }
   0xf   :  { %370 = shalt.err (!%p367_p7)
}
  0x10   :  { %s398_s16 = smov 128   ;;  %s399_s17 = smov 8  }
  0x11   :  { %19 = dma.hbm_to_vmem [thread:$0]  %s517_s0, 2048, %s14_s7, [#allocation3], %s398_s16, %s398_s16, %s399_s17  }
  0x12   :  { %393 = dma.done.wait [#allocation3], 2048  }
  0x13   :  { %394 = vsyncadd [#allocation3], 4294965248  ;;  %v425_v0 = vld [vmem:[#allocation2 + $0x10] sm:$0xff]  ;;  %v427_v1 = vld [vmem:[#allocation2] sm:$0xff]  ;;  %s400_s0 = smov [#allocation5]  }
  0x14   :  { %v429_v2 = vld [vmem:[#allocation2 + $0x18] sm:$0xff]  ;;  %v41_v3 = vmul.f32 %v425_v0, %v425_v0  ;;  %v39_v4 = vmul.f32 %v427_v1, %v427_v1  ;;  %v435_v5 = vld [vmem:[#allocation2 + $0x8] sm:$0xff]  ;;  %v443_v9 = vld [vmem:[#allocation2 + $0x20] sm:$0xff]  ;;  %s220_s20 = sshll.u32 %s400_s0, 4  ;;  %s221_s20 = int_to_ptr.vmem [resolvable:$true] %s220_s20 }
  0x15   :  { %v42_v6 = vmul.f32 %v429_v2, %v429_v2  ;;  %v40_v7 = vmul.f32 %v435_v5, %v435_v5  ;;  %v441_v8 = vld [vmem:[#allocation2 + $0x28] sm:$0xff]  ;;  %v43_v11 = vmul.f32 %v443_v9, %v443_v9  ;;  %v449_v12 = vld [vmem:[#allocation2 + $0x38] sm:$0xff]  ;;  %v451_v13 = vld [vmem:[#allocation2 + $0x30] sm:$0xff]  ;;  %s371_s21 = scalar_lea.vmem %s221_s20, 1024  ;;  %p376_p9 = scmp.lt.s32.totalorder %s221_s20, %s221_s20 }
  0x16   :  { %59 = vadd.xlane.f32.xlu1 %v41_v3  ;;  %55 = vadd.xlane.f32.xlu0 %v39_v4  ;;  %v44_v10 = vmul.f32 %v441_v8, %v441_v8  ;;  %v46_v14 = vmul.f32 %v449_v12, %v449_v12  ;;  %v45_v15 = vmul.f32 %v451_v13, %v451_v13  ;;  %v457_v16 = vld [vmem:[#allocation2 + $0x48] sm:$0xff]  ;;  %v459_v17 = vld [vmem:[#allocation2 + $0x40] sm:$0xff]  ;;  %v465_v20 = vld [vmem:[#allocation2 + $0x58] sm:$0xff]  ;;  %p372_p8 = scmp.ne.s32.totalorder %s221_s20, %s371_s21  ;;  %p377_p10 = scmp.lt.s32.totalorder %s371_s21, %s371_s21 }
  0x17   :  { %v48_v18 = vmul.f32 %v457_v16, %v457_v16  ;;  %v47_v19 = vmul.f32 %v459_v17, %v459_v17  ;;  %v467_v21 = vld [vmem:[#allocation2 + $0x50] sm:$0xff]  ;;  %v50_v22 = vmul.f32 %v465_v20, %v465_v20  ;;  %v473_v24 = vld [vmem:[#allocation2 + $0x68] sm:$0xff]  ;;  %v475_v25 = vld [vmem:[#allocation2 + $0x60] sm:$0xff] }
  0x18   :  { %v49_v23 = vmul.f32 %v467_v21, %v467_v21  ;;  %v52_v26 = vmul.f32 %v473_v24, %v473_v24  ;;  %v51_v27 = vmul.f32 %v475_v25, %v475_v25  ;;  %v481_v28 = vld [vmem:[#allocation2 + $0x78] sm:$0xff]  ;;  %v483_v29 = vld [vmem:[#allocation2 + $0x70] sm:$0xff]  ;;  %p378_p11 = por %p377_p10, %p376_p9 }
  0x19   :  { %v54_v30 = vmul.f32 %v481_v28, %v481_v28  ;;  %v53_v31 = vmul.f32 %v483_v29, %v483_v29 }
  0x1a   :  { %61 = vadd.xlane.f32.xlu1 %v42_v6  ;;  %57 = vadd.xlane.f32.xlu0 %v40_v7  ;;  %p379_p12 = pnand %p378_p11, %p372_p8 }
  0x1e   :  { %65 = vadd.xlane.f32.xlu1 %v44_v10  ;;  %63 = vadd.xlane.f32.xlu0 %v43_v11 }
  0x22   :  { %69 = vadd.xlane.f32.xlu1 %v46_v14  ;;  %67 = vadd.xlane.f32.xlu0 %v45_v15 }
  0x26   :  { %73 = vadd.xlane.f32.xlu1 %v48_v18  ;;  %71 = vadd.xlane.f32.xlu0 %v47_v19 }
  0x2a   :  { %77 = vadd.xlane.f32.xlu1 %v50_v22  ;;  %75 = vadd.xlane.f32.xlu0 %v49_v23 }
  0x2e   :  { %81 = vadd.xlane.f32.xlu1 %v52_v26  ;;  %79 = vadd.xlane.f32.xlu0 %v51_v27 }
  0x32   :  { %85 = vadd.xlane.f32.xlu1 %v54_v30  ;;  %83 = vadd.xlane.f32.xlu0 %v53_v31 }
  0xa3   :  { %v60_v32 = vpop.xlane.xlu1 %59  ;;  %v56_v33 = vpop.xlane.xlu0 %55 }
  0xa4   :  { %v89_v34 = vmax.f32 %v60_v32, 1e-24  ;;  %v87_v35 = vmax.f32 %v56_v33, 1e-24 }
  0xa6   :  { %317 = vrsqrt.f32 %v89_v34 }
  0xa7   :  { %v62_v36 = vpop.xlane.xlu1 %61  ;;  %v58_v37 = vpop.xlane.xlu0 %57  ;;  %319 = vrsqrt.f32 %v87_v35 }
  0xa8   :  { %v90_v38 = vmax.f32 %v62_v36, 1e-24  ;;  %v88_v39 = vmax.f32 %v58_v37, 1e-24 }
  0xaa   :  { %321 = vrsqrt.f32 %v90_v38 }
  0xab   :  { %323 = vrsqrt.f32 %v88_v39  ;;  %v66_v40 = vpop.xlane.xlu1 %65  ;;  %v64_v41 = vpop.xlane.xlu0 %63 }
  0xac   :  { %v92_v42 = vmax.f32 %v66_v40, 1e-24  ;;  %v91_v43 = vmax.f32 %v64_v41, 1e-24 }
  0xae   :  { %325 = vrsqrt.f32 %v92_v42 }
  0xaf   :  { %327 = vrsqrt.f32 %v91_v43  ;;  %v70_v44 = vpop.xlane.xlu1 %69  ;;  %v68_v45 = vpop.xlane.xlu0 %67 }
  0xb0   :  { %v94_v46 = vmax.f32 %v70_v44, 1e-24  ;;  %v93_v47 = vmax.f32 %v68_v45, 1e-24  ;;  %v318_v48 = vpop.eup %317 }
  0xb1   :  { %v320_v49 = vpop.eup %319  ;;  %v121_v56 = vmul.f32 %v318_v48, %v425_v0 }
  0xb2   :  { %329 = vrsqrt.f32 %v94_v46  ;;  %v119_v58 = vmul.f32 %v320_v49, %v427_v1 }
  0xb3   :  { %331 = vrsqrt.f32 %v93_v47  ;;  %v74_v50 = vpop.xlane.xlu1 %73  ;;  %v72_v51 = vpop.xlane.xlu0 %71 }
  0xb4   :  { %v322_v52 = vpop.eup %321  ;;  %v96_v53 = vmax.f32 %v74_v50, 1e-24  ;;  %v95_v54 = vmax.f32 %v72_v51, 1e-24 }
  0xb5   :  { %v324_v55 = vpop.eup %323  ;;  %v122_v57 = vmul.f32 %v322_v52, %v429_v2 }
  0xb6   :  { %v120_v59 = vmul.f32 %v324_v55, %v435_v5  ;;  %333 = vrsqrt.f32 %v96_v53 }
  0xb7   :  { %v272_v60 = vpack.c.bf16 %v122_v57, %v121_v56  ;;  %335 = vrsqrt.f32 %v95_v54  ;;  %v78_v61 = vpop.xlane.xlu1 %77  ;;  %v76_v62 = vpop.xlane.xlu0 %75 }
  0xb8   :  { %v326_v63 = vpop.eup %325  ;;  %v267_v3 = vpack.c.bf16 %v120_v59, %v119_v58  ;;  %v98_v4 = vmax.f32 %v78_v61, 1e-24  ;;  %v97_v6 = vmax.f32 %v76_v62, 1e-24 }
  0xb9   :  { %v328_v7 = vpop.eup %327  ;;  %304 = vst [vmem:[#allocation5 + $0x8] sm:$0xff] %v272_v60   ;;  %v124_v10 = vmul.f32 %v326_v63, %v441_v8 }
  0xba   :  { %268 = vst [vmem:[#allocation5] sm:$0xff] %v267_v3   ;;  %v123_v0 = vmul.f32 %v328_v7, %v443_v9  ;;  %337 = vrsqrt.f32 %v98_v4 }
  0xbb   :  { %339 = vrsqrt.f32 %v97_v6  ;;  %v82_v1 = vpop.xlane.xlu1 %81  ;;  %v80_v2 = vpop.xlane.xlu0 %79 }
  0xbc   :  { %v330_v5 = vpop.eup %329  ;;  %v277_v11 = vpack.c.bf16 %v124_v10, %v123_v0  ;;  %v100_v14 = vmax.f32 %v82_v1, 1e-24  ;;  %v99_v15 = vmax.f32 %v80_v2, 1e-24 }
  0xbd   :  { %v332_v18 = vpop.eup %331  ;;  %v126_v19 = vmul.f32 %v330_v5, %v449_v12 }
  0xbe   :  { %305 = vst [vmem:[#allocation5 + $0x10] sm:$0xff] %v277_v11   ;;  %v125_v22 = vmul.f32 %v332_v18, %v451_v13  ;;  %341 = vrsqrt.f32 %v100_v14 }
  0xbf   :  { %343 = vrsqrt.f32 %v99_v15  ;;  %v86_v8 = vpop.xlane.xlu1 %85  ;;  %v84_v23 = vpop.xlane.xlu0 %83 }
  0xc0   :  { %v334_v26 = vpop.eup %333  ;;  %v282_v9 = vpack.c.bf16 %v126_v19, %v125_v22  ;;  %v102_v27 = vmax.f32 %v86_v8, 1e-24  ;;  %v101_v30 = vmax.f32 %v84_v23, 1e-24 }
  0xc1   :  { %v336_v31 = vpop.eup %335  ;;  %v128_v32 = vmul.f32 %v334_v26, %v457_v16 }
  0xc2   :  { %306 = vst [vmem:[#allocation5 + $0x18] sm:$0xff] %v282_v9   ;;  %v127_v33 = vmul.f32 %v336_v31, %v459_v17  ;;  %345 = vrsqrt.f32 %v102_v27 }
  0xc3   :  { %347 = vrsqrt.f32 %v101_v30 }
  0xc4   :  { %v338_v12 = vpop.eup %337  ;;  %v287_v34 = vpack.c.bf16 %v128_v32, %v127_v33 }
  0xc5   :  { %v340_v35 = vpop.eup %339  ;;  %v130_v13 = vmul.f32 %v338_v12, %v465_v20 }
  0xc6   :  { %307 = vst [vmem:[#allocation5 + $0x20] sm:$0xff] %v287_v34   ;;  %v129_v36 = vmul.f32 %v340_v35, %v467_v21 }
  0xc8   :  { %v342_v37 = vpop.eup %341  ;;  %v292_v38 = vpack.c.bf16 %v130_v13, %v129_v36 }
  0xc9   :  { %v344_v39 = vpop.eup %343  ;;  %v132_v40 = vmul.f32 %v342_v37, %v473_v24 }
  0xca   :  { %308 = vst [vmem:[#allocation5 + $0x28] sm:$0xff] %v292_v38   ;;  %v131_v16 = vmul.f32 %v344_v39, %v475_v25 }
  0xcc   :  { %v346_v41 = vpop.eup %345  ;;  %v297_v17 = vpack.c.bf16 %v132_v40, %v131_v16 }
  0xcd   :  { %v348_v42 = vpop.eup %347  ;;  %v134_v43 = vmul.f32 %v346_v41, %v481_v28 }
  0xce   :  { %309 = vst [vmem:[#allocation5 + $0x30] sm:$0xff] %v297_v17   ;;  %v133_v20 = vmul.f32 %v348_v42, %v483_v29 }
  0xd0   :  { %v302_v21 = vpack.c.bf16 %v134_v43, %v133_v20 }
  0xd2   :  { %310 = vst [vmem:[#allocation5 + $0x38] sm:$0xff] %v302_v21  }
  0xd3   :  { %382 = shalt.err (!%p379_p12)
}
  0xd4   :  { %s383_s24 = scalar_lea.hbm %s518_s1, 1024 }
  0xd5   :  { %p384_p13 = scmp.ne.s32.totalorder %s518_s1, %s383_s24  ;;  %p387_p0 = scmp.lt.u32.totalorder %s383_s24, %s518_s1 }
  0xd7   :  { %p389_p1 = pnand %p387_p0, %p384_p13 }
  0xd9   :  { %392 = shalt.err (!%p389_p1)
}
  0xda   :  { %s401_s29 = smov 64   ;;  %s402_s30 = smov 4  }
  0xdb   :  { %226 = dma.vmem_to_hbm [thread:$0]  %s221_s20, 1024, %s518_s1, [#allocation4], %s401_s29, %s401_s29, %s402_s30  }
  0xdc   :  { %395 = dma.done.wait [#allocation4], 1024  }
  0xdd   :  { %396 = vsyncadd [#allocation4], 4294966272 }
  0xde   :  { %230 = vsyncpa [#allocation3], 1 }
  0xdf   :  { %231 = vsyncpa [#allocation4], 1 }

</bundles_post_ra>
